<compile_context>
chip_gen: v7x
topology: tpu7x:2x2x1
jax: 0.10.0
libtpu: 0.0.40
codegen_flags: <defaults>
</compile_context>

<pallas_src>
import functools

import jax
import jax.numpy as jnp
from jax import lax
from jax.experimental import pallas as pl
from jax.experimental.pallas import tpu as pltpu

_LANE = 128


def _round_up(x, m):
    return (x + m - 1) // m * m


# ---------------------------------------------------------------------------
# On-device step-size selection (power iteration estimate of ||A||_2)
# ---------------------------------------------------------------------------
def _estimate_op_norm(A, iters=50):
    n = A.shape[1]
    v0 = jnp.full((n,), 1.0 / jnp.sqrt(jnp.float32(n)), jnp.float32)

    def body(_, v):
        w = A.T @ (A @ v)
        return w / (jnp.linalg.norm(w) + 1e-30)

    v = lax.fori_loop(0, iters, body, v0)
    return jnp.linalg.norm(A @ v)


def _pdhg_steps(A):
    est = _estimate_op_norm(A)
    step = 0.9 / (1.01 * est + 1e-30)     # tau * sigma * ||A||_2^2 ~ 0.8 < 1
    return step, step


# ---------------------------------------------------------------------------
# Pallas kernel: batched PDHG LP solve (one batch tile per grid point)
# ---------------------------------------------------------------------------
def _lp_pdhg_kernel(theta_tau_ref, a_tau_ref, at_sigma_ref, b_sigma_ref,
                    lb_ref, ub_ref, x_out_ref, *, n_iters, unroll, mxu_dtype):
    theta_tau = theta_tau_ref[...]                    # (TB, N)  tau * theta
    A_tau = a_tau_ref[...].astype(mxu_dtype)          # (Mp, N)  tau * A
    AT_sigma = at_sigma_ref[...].astype(mxu_dtype)    # (N, Mp)  (sigma * A)^T
    b_sigma = b_sigma_ref[...]                        # (1, Mp)  sigma * b
    lb = lb_ref[...]                                  # (1, N)
    ub = ub_ref[...]                                  # (1, N)

    tb, n = theta_tau.shape
    mp = A_tau.shape[0]

    x0 = jnp.zeros((tb, n), jnp.float32)   # primal iterate
    y0 = jnp.zeros((tb, mp), jnp.float32)  # dual iterate, y >= 0

    def step(carry):
        x, y = carry
        # primal: x <- Proj_[lb,ub]( x - tau*theta - y @ (tau*A) )
        aty = jnp.dot(y.astype(mxu_dtype), A_tau,
                      preferred_element_type=jnp.float32)            # (TB, N)
        x_new = jnp.clip(x - theta_tau - aty, lb, ub)
        # dual:   y <- max(0, y + (2 x_new - x) @ (sigma*A)^T - sigma*b)
        x_bar = 2.0 * x_new - x
        ax = jnp.dot(x_bar.astype(mxu_dtype), AT_sigma,
                     preferred_element_type=jnp.float32)              # (TB, Mp)
        y_new = jnp.maximum(y + ax - b_sigma, 0.0)
        return x_new, y_new

    def body(_, carry):
        for _u in range(unroll):               # manual partial unroll
            carry = step(carry)
        return carry

    x_fin, _ = lax.fori_loop(0, n_iters // unroll, body, (x0, y0))
    x_out_ref[...] = x_fin


# ---------------------------------------------------------------------------
# Wrapper: padding, step-size folding, batch tiling, pallas_call plumbing
# ---------------------------------------------------------------------------
def _choose_tile_b(B, tile_b):
    tile_b = min(tile_b, B)
    cands = [t for t in (tile_b, 256, 128, 64, 32, 16, 8)
             if 0 < t <= B and B % t == 0]
    if not cands:
        raise ValueError(f"batch {B} has no usable sublane tile size")
    # Prefer >= 2 grid points so v7x's second TensorCore gets work.
    multi = [t for t in cands if B // t >= 2]
    return max(multi) if multi else max(cands)


def lp_forward(theta, A, b, lb, ub, *, n_iters=400, tile_b=128, unroll=2,
               mxu_dtype=jnp.float32):
    """Solve  min_x theta^T x  s.t.  A x <= b,  lb <= x <= ub  (batched)."""
    theta = theta.astype(jnp.float32)
    A = A.astype(jnp.float32)
    b = b.astype(jnp.float32).reshape(1, -1)
    lb = lb.astype(jnp.float32).reshape(1, -1)
    ub = ub.astype(jnp.float32).reshape(1, -1)

    B, N = theta.shape
    M = A.shape[0]
    if n_iters % unroll != 0:
        raise ValueError(f"n_iters {n_iters} must be divisible by unroll {unroll}")

    tile_b = _choose_tile_b(B, tile_b)

    # Lane-pad the constraint axis: zero rows in A, zero rhs.  Padded duals
    # stay at 0 (0 <= 0 is satisfied with equality), so x is unchanged.
    Mp = _round_up(M, _LANE)
    A_pad = jnp.pad(A, ((0, Mp - M), (0, 0)))
    b_pad = jnp.pad(b, ((0, 0), (0, Mp - M)))          # pad value 0 (>= 0)

    # Fold step sizes into the data once (saves two multiplies + one add per
    # PDHG iteration).  One transpose of A, outside the loop.
    tau, sigma = _pdhg_steps(A)
    theta_tau = tau * theta                             # (B, N)
    A_tau = tau * A_pad                                 # (Mp, N)
    AT_sigma = (sigma * A_pad).T                        # (N, Mp)
    b_sigma = sigma * b_pad                             # (1, Mp)

    kernel = functools.partial(_lp_pdhg_kernel, n_iters=n_iters,
                               unroll=unroll, mxu_dtype=mxu_dtype)

    grid = (B // tile_b,)
    return pl.pallas_call(
        kernel,
        out_shape=jax.ShapeDtypeStruct((B, N), jnp.float32),
        grid=grid,
        in_specs=[
            pl.BlockSpec((tile_b, N), lambda i: (i, 0)),   # tau * theta tile
            pl.BlockSpec((Mp, N), lambda i: (0, 0)),       # tau * A (resident)
            pl.BlockSpec((N, Mp), lambda i: (0, 0)),       # (sigma*A)^T (resident)
            pl.BlockSpec((1, Mp), lambda i: (0, 0)),       # sigma * b
            pl.BlockSpec((1, N), lambda i: (0, 0)),        # lb
            pl.BlockSpec((1, N), lambda i: (0, 0)),        # ub
        ],
        out_specs=pl.BlockSpec((tile_b, N), lambda i: (i, 0)),
        compiler_params=pltpu.CompilerParams(
            dimension_semantics=("parallel",)),            # 2x on v7x
    )(theta_tau, A_tau, AT_sigma, b_sigma, lb, ub)


# ---------------------------------------------------------------------------
# Pure-JAX reference (identical PDHG algorithm, unpadded) for correctness
# ---------------------------------------------------------------------------
def lp_forward_ref(theta, A, b, lb, ub, *, n_iters=400):
    theta = theta.astype(jnp.float32)
    A = A.astype(jnp.float32)
    tau, sigma = _pdhg_steps(A)
    x = jnp.zeros_like(theta)
    y = jnp.zeros((theta.shape[0], A.shape[0]), jnp.float32)
    hi = lax.Precision.HIGHEST

    def body(_, carry):
        x, y = carry
        grad = theta + jnp.dot(y, A, precision=hi)
        x_new = jnp.clip(x - tau * grad, lb, ub)
        x_bar = 2.0 * x_new - x
        resid = jnp.dot(x_bar, A.T, precision=hi) - b
        y_new = jnp.maximum(y + sigma * resid, 0.0)
        return x_new, y_new

    x, _ = lax.fori_loop(0, n_iters, body, (x, y))
    return x


# ---------------------------------------------------------------------------
# Deterministic synthetic LP "model" (stands in for the gp.Model in __init__)
# ---------------------------------------------------------------------------
def make_synthetic_lp(key, n_vars, n_cons):
    k_a, k_x = jax.random.split(key)
    A = jax.random.normal(k_a, (n_cons, n_vars), jnp.float32) / jnp.sqrt(n_vars)
    lb = -jnp.ones((1, n_vars), jnp.float32)
    ub = jnp.ones((1, n_vars), jnp.float32)
    # rhs chosen so the LP is strictly feasible (interior point exists).
    x_feas = jax.random.uniform(k_x, (n_vars,), jnp.float32, -0.5, 0.5)
    b = (A @ x_feas + 0.5).reshape(1, n_cons)
    return A, b, lb, ub


if __name__ == "__main__":
    key = jax.random.PRNGKey(0)
    k_lp, k_theta = jax.random.split(key)

    # 256 = 2 x 128-row tiles: exercises the batch grid and keeps both v7x
    # TensorCores fed; M=64 exercises the lane-padding path (-> Mp=128).
    B, N_VARS, N_CONS = 256, 128, 64
    A, b, lb, ub = make_synthetic_lp(k_lp, N_VARS, N_CONS)
    theta = jax.random.normal(k_theta, (B, N_VARS), jnp.float32)

    fwd = jax.jit(functools.partial(lp_forward, n_iters=400, tile_b=128))
    x_opt = jax.block_until_ready(fwd(theta, A, b, lb, ub))

    # Sanity checks: shape, finiteness, bounds respected.
    assert x_opt.shape == (B, N_VARS)
    assert bool(jnp.all(jnp.isfinite(x_opt)))
    assert bool(jnp.all(x_opt >= lb - 1e-5)) and bool(jnp.all(x_opt <= ub + 1e-5))

    # Agreement with the pure-JAX PDHG reference (same algorithm, unpadded).
    x_ref = jax.block_until_ready(lp_forward_ref(theta, A, b, lb, ub, n_iters=400))
    max_err = float(jnp.max(jnp.abs(x_opt - x_ref)))
    assert max_err < 1e-2, f"max |pallas - ref| = {max_err}"

    print("KERNEL_OK")
</pallas_src>

<mosaic_0001>
module attributes {stable_mosaic.version = 11 : i64} {
  func.func @_lp_pdhg_kernel(%arg0: i32, %arg1: memref<128x128xf32, #tpu.memory_space<vmem>>, %arg2: memref<128x128xf32, #tpu.memory_space<vmem>>, %arg3: memref<128x128xf32, #tpu.memory_space<vmem>>, %arg4: memref<1x128xf32, #tpu.memory_space<vmem>>, %arg5: memref<1x128xf32, #tpu.memory_space<vmem>>, %arg6: memref<1x128xf32, #tpu.memory_space<vmem>>, %arg7: memref<128x128xf32, #tpu.memory_space<vmem>>) attributes {dimension_semantics = [#tpu.dimension_semantics<parallel>], iteration_bounds = array<i64: 2>, scalar_prefetch = 0 : i64, scratch_operands = 0 : i64, tpu.core_type = #tpu.core_type<tc>, window_params = [{transform_indices = @transform_0, window_bounds = array<i64: 128, 128>}, {pipeline_mode = #tpu.pipeline_mode<synchronous>, transform_indices = @transform_1, window_bounds = array<i64: 128, 128>}, {pipeline_mode = #tpu.pipeline_mode<synchronous>, transform_indices = @transform_2, window_bounds = array<i64: 128, 128>}, {pipeline_mode = #tpu.pipeline_mode<synchronous>, transform_indices = @transform_3, window_bounds = array<i64: 1, 128>}, {pipeline_mode = #tpu.pipeline_mode<synchronous>, transform_indices = @transform_4, window_bounds = array<i64: 1, 128>}, {pipeline_mode = #tpu.pipeline_mode<synchronous>, transform_indices = @transform_5, window_bounds = array<i64: 1, 128>}, {transform_indices = @transform_6, window_bounds = array<i64: 128, 128>}]} {
    %c0 = arith.constant 0 : index
    %c0_0 = arith.constant 0 : index
    %0 = vector.load %arg1[%c0, %c0_0] : memref<128x128xf32, #tpu.memory_space<vmem>>, vector<128x128xf32>
    %c0_1 = arith.constant 0 : index
    %c0_2 = arith.constant 0 : index
    %1 = vector.load %arg2[%c0_1, %c0_2] : memref<128x128xf32, #tpu.memory_space<vmem>>, vector<128x128xf32>
    %c0_3 = arith.constant 0 : index
    %c0_4 = arith.constant 0 : index
    %2 = vector.load %arg3[%c0_3, %c0_4] : memref<128x128xf32, #tpu.memory_space<vmem>>, vector<128x128xf32>
    %c0_5 = arith.constant 0 : index
    %c0_6 = arith.constant 0 : index
    %3 = vector.load %arg4[%c0_5, %c0_6] : memref<1x128xf32, #tpu.memory_space<vmem>>, vector<1x128xf32>
    %c0_7 = arith.constant 0 : index
    %c0_8 = arith.constant 0 : index
    %4 = vector.load %arg5[%c0_7, %c0_8] : memref<1x128xf32, #tpu.memory_space<vmem>>, vector<1x128xf32>
    %c0_9 = arith.constant 0 : index
    %c0_10 = arith.constant 0 : index
    %5 = vector.load %arg6[%c0_9, %c0_10] : memref<1x128xf32, #tpu.memory_space<vmem>>, vector<1x128xf32>
    %cst = arith.constant 0.000000e+00 : f32
    %6 = vector.broadcast %cst : f32 to vector<128x128xf32>
    %cst_11 = arith.constant 0.000000e+00 : f32
    %7 = vector.broadcast %cst_11 : f32 to vector<128x128xf32>
    %c0_i32 = arith.constant 0 : i32
    %c200_i32 = arith.constant 200 : i32
    %8 = arith.addi %c0_i32, %c200_i32 : i32
    %c1_i32 = arith.constant 1 : i32
    %9:2 = scf.for %arg8 = %c0_i32 to %8 step %c1_i32 iter_args(%arg9 = %6, %arg10 = %7) -> (vector<128x128xf32>, vector<128x128xf32>)  : i32 {
      %cst_14 = arith.constant dense<0.000000e+00> : vector<128x128xf32>
      %11 = tpu.matmul %arg10, %1, %cst_14 {dimension_numbers = #tpu.dot_dimension_numbers<[1], [0], [0], [1], [0, 0, 1, 1], [], []>} : vector<128x128xf32>, vector<128x128xf32>, vector<128x128xf32> -> vector<128x128xf32>
      %12 = arith.subf %arg9, %0 : vector<128x128xf32>
      %13 = arith.subf %12, %11 : vector<128x128xf32>
      %14 = vector.broadcast %4 : vector<1x128xf32> to vector<128x128xf32>
      %15 = arith.maximumf %14, %13 : vector<128x128xf32>
      %16 = vector.broadcast %5 : vector<1x128xf32> to vector<128x128xf32>
      %17 = arith.minimumf %16, %15 : vector<128x128xf32>
      %cst_15 = arith.constant 2.000000e+00 : f32
      %18 = vector.broadcast %cst_15 : f32 to vector<128x128xf32>
      %19 = arith.mulf %18, %17 : vector<128x128xf32>
      %20 = arith.subf %19, %arg9 : vector<128x128xf32>
      %cst_16 = arith.constant dense<0.000000e+00> : vector<128x128xf32>
      %21 = tpu.matmul %20, %2, %cst_16 {dimension_numbers = #tpu.dot_dimension_numbers<[1], [0], [0], [1], [0, 0, 1, 1], [], []>} : vector<128x128xf32>, vector<128x128xf32>, vector<128x128xf32> -> vector<128x128xf32>
      %22 = arith.addf %arg10, %21 : vector<128x128xf32>
      %23 = vector.broadcast %3 : vector<1x128xf32> to vector<128x128xf32>
      %24 = arith.subf %22, %23 : vector<128x128xf32>
      %cst_17 = arith.constant 0.000000e+00 : f32
      %25 = vector.broadcast %cst_17 : f32 to vector<128x128xf32>
      %26 = arith.maximumf %24, %25 : vector<128x128xf32>
      %cst_18 = arith.constant dense<0.000000e+00> : vector<128x128xf32>
      %27 = tpu.matmul %26, %1, %cst_18 {dimension_numbers = #tpu.dot_dimension_numbers<[1], [0], [0], [1], [0, 0, 1, 1], [], []>} : vector<128x128xf32>, vector<128x128xf32>, vector<128x128xf32> -> vector<128x128xf32>
      %28 = arith.subf %17, %0 : vector<128x128xf32>
      %29 = arith.subf %28, %27 : vector<128x128xf32>
      %30 = vector.broadcast %4 : vector<1x128xf32> to vector<128x128xf32>
      %31 = arith.maximumf %30, %29 : vector<128x128xf32>
      %32 = vector.broadcast %5 : vector<1x128xf32> to vector<128x128xf32>
      %33 = arith.minimumf %32, %31 : vector<128x128xf32>
      %cst_19 = arith.constant 2.000000e+00 : f32
      %34 = vector.broadcast %cst_19 : f32 to vector<128x128xf32>
      %35 = arith.mulf %34, %33 : vector<128x128xf32>
      %36 = arith.subf %35, %17 : vector<128x128xf32>
      %cst_20 = arith.constant dense<0.000000e+00> : vector<128x128xf32>
      %37 = tpu.matmul %36, %2, %cst_20 {dimension_numbers = #tpu.dot_dimension_numbers<[1], [0], [0], [1], [0, 0, 1, 1], [], []>} : vector<128x128xf32>, vector<128x128xf32>, vector<128x128xf32> -> vector<128x128xf32>
      %38 = arith.addf %26, %37 : vector<128x128xf32>
      %39 = vector.broadcast %3 : vector<1x128xf32> to vector<128x128xf32>
      %40 = arith.subf %38, %39 : vector<128x128xf32>
      %cst_21 = arith.constant 0.000000e+00 : f32
      %41 = vector.broadcast %cst_21 : f32 to vector<128x128xf32>
      %42 = arith.maximumf %40, %41 : vector<128x128xf32>
      scf.yield %33, %42 : vector<128x128xf32>, vector<128x128xf32>
    }
    %c0_12 = arith.constant 0 : index
    %c0_13 = arith.constant 0 : index
    %10 = vector.load %arg7[%c0_12, %c0_13] : memref<128x128xf32, #tpu.memory_space<vmem>>, vector<128x128xf32>
    tpu.vector_store %arg7[%c0_12, %c0_13], %9#0 {strides = array<i32>} : memref<128x128xf32, #tpu.memory_space<vmem>>, vector<128x128xf32>,
    return
  }
  func.func @transform_0(%arg0: i32) -> (i32, i32) {
    %c0_i32 = arith.constant 0 : i32
    %c0_i32_0 = arith.constant 0 : i32
    return %arg0, %c0_i32 : i32, i32
  }
  func.func @transform_1(%arg0: i32) -> (i32, i32) {
    %c0_i32 = arith.constant 0 : i32
    %c0_i32_0 = arith.constant 0 : i32
    %c0_i32_1 = arith.constant 0 : i32
    return %c0_i32, %c0_i32_0 : i32, i32
  }
  func.func @transform_2(%arg0: i32) -> (i32, i32) {
    %c0_i32 = arith.constant 0 : i32
    %c0_i32_0 = arith.constant 0 : i32
    %c0_i32_1 = arith.constant 0 : i32
    return %c0_i32, %c0_i32_0 : i32, i32
  }
  func.func @transform_3(%arg0: i32) -> (i32, i32) {
    %c0_i32 = arith.constant 0 : i32
    %c0_i32_0 = arith.constant 0 : i32
    %c0_i32_1 = arith.constant 0 : i32
    return %c0_i32, %c0_i32_0 : i32, i32
  }
  func.func @transform_4(%arg0: i32) -> (i32, i32) {
    %c0_i32 = arith.constant 0 : i32
    %c0_i32_0 = arith.constant 0 : i32
    %c0_i32_1 = arith.constant 0 : i32
    return %c0_i32, %c0_i32_0 : i32, i32
  }
  func.func @transform_5(%arg0: i32) -> (i32, i32) {
    %c0_i32 = arith.constant 0 : i32
    %c0_i32_0 = arith.constant 0 : i32
    %c0_i32_1 = arith.constant 0 : i32
    return %c0_i32, %c0_i32_0 : i32, i32
  }
  func.func @transform_6(%arg0: i32) -> (i32, i32) {
    %c0_i32 = arith.constant 0 : i32
    %c0_i32_0 = arith.constant 0 : i32
    return %arg0, %c0_i32 : i32, i32
  }
}

</mosaic_0001>

<bundles_post_ra>
// kernel: custom-call
= control target key start
LH: loop header
LB: loop body
LE: loop exit
PB: predicated region body
PF: predicated region fallthrough
CT: control target
= control target key end

     0   :  { %s6_s0 = inlined_call_operand.vmem [shape: f32[128], index: 0, kind: output, shape index: {}]  }

// kernel: lp_forward.1
= control target key start
LH: loop header
LB: loop body
LE: loop exit
PB: predicated region body
PF: predicated region fallthrough
CT: control target
= control target key end

     0   :  { %11 = vsyncpa [#allocation3], 0  ;;  %s3667_s0 = inlined_call_operand.vmem [shape: f32[256,128], index: 0, kind: input, shape index: {}]   ;;  %s3668_s1 = inlined_call_operand.vmem [shape: f32[128,128], index: 1, kind: input, shape index: {}]   ;;  %s3669_s2 = inlined_call_operand.vmem [shape: f32[128,128], index: 2, kind: input, shape index: {}]   ;;  %s3670_s3 = inlined_call_operand.vmem [shape: f32[1,128], index: 3, kind: input, shape index: {}]   ;;  %s3671_s4 = inlined_call_operand.vmem [shape: f32[1,128], index: 4, kind: input, shape index: {}]   ;;  %s3672_s5 = inlined_call_operand.vmem [shape: f32[1,128], index: 5, kind: input, shape index: {}]   ;;  %s3673_s6 = inlined_call_operand.hbm [shape: f32[256,128], index: 6, kind: output, shape index: {}]  }
   0x1   :  { %13 = vsyncpa [#allocation3 + $0x1], 0  ;;  %s2588_s21 = smov 0   ;;  %s2590_s22 = smov 0  }
   0x2   :  { %s2592_s23 = smov 0   ;;  %s2594_s24 = smov 0  }
   0x3 LB: > { %s2609_s25 = sadd.s32 4294967295, %s2416_s24   ;;  %s1421_s26 = sadd.s32 4294967294, %s2416_s24   ;;  %s2416_s24 = sphi %s2594_s24, %s3858_s24   ;;  %s2412_s23 = sphi %s2592_s23, %s3857_s23   ;;  %s2408_s22 = sphi %s2590_s22, %s3856_s22   ;;  %s2404_s21 = sphi %s2588_s21, %s3855_s21  }
   0x4   : > { %s2613_s27 = sadd.s32 1, %s2416_s24   ;;  %s157_s28 = sadd.s32 1, %s2412_s23 }
   0x5   : > { %s154_s29 = ssub.s32 %s2416_s24, %s2613_s27  ;;  %p167_p0 = scmp.ne.s32.totalorder %s2412_s23, %s2408_s22 }
   0x6   : > { %p155_p1 = scmp.eq.s32.totalorder %s154_s29, 0  ;;  %p168_p2 = scmp.eq.s32.totalorder %s2609_s25, 1 }
   0x7   : > { %p173_p3 = scmp.ne.s32.totalorder %s2408_s22, %s2404_s21  ;;  %p174_p4 = scmp.eq.s32.totalorder %s1421_s26, 1 }
   0x8   : > { %s2624_s30 = scalar_select %p155_p1, %s2412_s23, %s157_s28  }
   0x9   : > { %p2626_p5 = por %p168_p2, %p167_p0  ;;  %p2630_p6 = por %p174_p4, %p173_p3 }
   0xa   : > { %p1424_p7 = scmp.ge.s32.totalorder %s2416_s24, 1  ;;  %p216_p8 = scmp.lt.s32.totalorder %s2416_s24, 3 }
   0xc   : > { %p217_p9 = pnand %p1424_p7, %p216_p8 }
   0xe   : > { %220 = sbr.rel (%p217_p9) target bundleno = 1012 (0x3f4), region = 44 }
  0x15   : > { %s243_s9 = sand.u32 1, %s2408_s22   ;;  %s1426_s10 = sshll.u32 %s2609_s25, 4  ;;  %v2641_v0 = vld [vmem:[%s3668_s1] sm:$0xff]  ;;  %v2646_v1 = vld [vmem:[%s3668_s1 + $0x8] sm:$0xff]  ;;  %v2651_v2 = vld [vmem:[%s3668_s1 + $0x10] sm:$0xff]  ;;  %v2855_v51 = vmov 0.0  }
  0x16   : > { %3705 = vst [vmem:[#allocation5_spill] sm:$0xff] %v2641_v0  ;;  %3706 = vst [vmem:[#allocation6_spill] sm:$0xff] %v2646_v1  ;;  %s2655_s17 = sshll.u32 %s243_s9, 7  ;;  %p247_p10 = scmp.lt.s32.totalorder %s1426_s10, 31  ;;  %v2660_v3 = vld [vmem:[%s3668_s1 + $0x18] sm:$0xff]  ;;  %v2665_v4 = vld [vmem:[%s3668_s1 + $0x20] sm:$0xff] }
  0x17   : > { %3707 = vst [vmem:[#allocation7_spill] sm:$0xff] %v2651_v2  ;;  %3708 = vst [vmem:[#allocation8_spill] sm:$0xff] %v2660_v3  ;;  %v2670_v5 = vld [vmem:[%s3668_s1 + $0x28] sm:$0xff]  ;;  %v2675_v6 = vld [vmem:[%s3668_s1 + $0x30] sm:$0xff]  ;;  %s2853_s29 = scalar_lea.vmem [#allocation2], %s2655_s17  ;;  %v2857_v52 = vmov 0.0  }
  0x18   : > { %3709 = vst [vmem:[#allocation9_spill] sm:$0xff] %v2665_v4  ;;  %3710 = vst [vmem:[#allocation10_spill] sm:$0xff] %v2670_v5  ;;  %v2680_v7 = vld [vmem:[%s3668_s1 + $0x38] sm:$0xff]  ;;  %v2685_v8 = vld [vmem:[%s3668_s1 + $0x40] sm:$0xff]  ;;  %s3860_s10 = smov (!%p247_p10, %s1426_s10), 31  ;;  %v2859_v53 = vmov 0.0  }
  0x19   : > { %3711 = vst [vmem:[#allocation11_spill] sm:$0xff] %v2675_v6  ;;  %3712 = vst [vmem:[#allocation12_spill] sm:$0xff] %v2680_v7  ;;  %v2690_v9 = vld [vmem:[%s3668_s1 + $0x48] sm:$0xff]  ;;  %v2695_v10 = vld [vmem:[%s3668_s1 + $0x50] sm:$0xff]  ;;  %s1427_s18 = sshll.u32 %s3860_s10, 3  ;;  %v2861_v54 = vmov 0.0  }
  0x1a   : > { %3713 = vst [vmem:[#allocation13_spill] sm:$0xff] %v2685_v8  ;;  %3714 = vst [vmem:[#allocation14_spill] sm:$0xff] %v2690_v9  ;;  %v2700_v11 = vld [vmem:[%s3668_s1 + $0x58] sm:$0xff]  ;;  %v2705_v12 = vld [vmem:[%s3668_s1 + $0x60] sm:$0xff]  ;;  %s250_s14 = scalar_lea.vmem %s3667_s0, %s1427_s18  ;;  %v2863_v55 = vmov 0.0   ;;  %v2865_v56 = vmov 0.0  }
  0x1b   : > { %3715 = vst [vmem:[#allocation15_spill] sm:$0xff] %v2695_v10  ;;  %3716 = vst [vmem:[#allocation16_spill] sm:$0xff] %v2700_v11  ;;  %v2710_v13 = vld [vmem:[%s3668_s1 + $0x68] sm:$0xff]  ;;  %v2715_v14 = vld [vmem:[%s3668_s1 + $0x70] sm:$0xff]  ;;  %v2867_v57 = vmov 0.0   ;;  %v2869_v58 = vmov 0.0  }
  0x1c   : > { %3717 = vst [vmem:[#allocation17_spill] sm:$0xff] %v2705_v12  ;;  %3718 = vst [vmem:[#allocation18_spill] sm:$0xff] %v2710_v13  ;;  %v2720_v15 = vld [vmem:[%s3668_s1 + $0x78] sm:$0xff]  ;;  %v2725_v16 = vld [vmem:[%s3669_s2] sm:$0xff]  ;;  %v2871_v59 = vmov 0.0   ;;  %v2873_v60 = vmov 0.0  }
  0x1d   : > { %3719 = vst [vmem:[#allocation19_spill] sm:$0xff] %v2715_v14  ;;  %3720 = vst [vmem:[#allocation20_spill] sm:$0xff] %v2720_v15  ;;  %v2730_v17 = vld [vmem:[%s3669_s2 + $0x8] sm:$0xff]  ;;  %v2738_v18 = vld [vmem:[%s3669_s2 + $0x10] sm:$0xff]  ;;  %v2875_v61 = vmov 0.0   ;;  %v2877_v62 = vmov 0.0  }
  0x1e   : > { %3721 = vst [vmem:[#allocation21_spill] sm:$0xff] %v2725_v16  ;;  %3722 = vst [vmem:[#allocation22_spill] sm:$0xff] %v2730_v17  ;;  %v2743_v19 = vld [vmem:[%s3669_s2 + $0x18] sm:$0xff]  ;;  %v2748_v20 = vld [vmem:[%s3669_s2 + $0x20] sm:$0xff]  ;;  %v2879_v63 = vmov 0.0   ;;  %s2919_s17 = smov 0  }
  0x1f   : > { %3723 = vst [vmem:[#allocation23_spill] sm:$0xff] %v2738_v18  ;;  %3724 = vst [vmem:[#allocation24_spill] sm:$0xff] %v2743_v19  ;;  %v2750_v21 = vld [vmem:[%s250_s14] sm:$0xff]  ;;  %v2752_v22 = vld [vmem:[%s250_s14 + $0x8] sm:$0xff] }
  0x20   : > { %3725 = vst [vmem:[#allocation25_spill] sm:$0xff] %v2748_v20  ;;  %3726 = vst [vmem:[#allocation26_spill] sm:$0xff] %v2750_v21  ;;  %v2754_v23 = vld [vmem:[%s250_s14 + $0x10] sm:$0xff]  ;;  %v2756_v24 = vld [vmem:[%s250_s14 + $0x18] sm:$0xff]  ;;  %v2915_v21 = vmov 0.0  }
  0x21   : > { %3727 = vst [vmem:[#allocation27_spill] sm:$0xff] %v2752_v22  ;;  %3728 = vst [vmem:[#allocation28_spill] sm:$0xff] %v2754_v23  ;;  %v2758_v25 = vld [vmem:[%s250_s14 + $0x20] sm:$0xff]  ;;  %v2760_v26 = vld [vmem:[%s250_s14 + $0x28] sm:$0xff]  ;;  %v2911_v23 = vmov 0.0   ;;  %v2917_v22 = vmov 0.0  }
  0x22   : > { %3729 = vst [vmem:[#allocation29_spill] sm:$0xff] %v2756_v24  ;;  %3730 = vst [vmem:[#allocation30_spill] sm:$0xff] %v2758_v25  ;;  %v2762_v27 = vld [vmem:[%s250_s14 + $0x30] sm:$0xff]  ;;  %v2764_v28 = vld [vmem:[%s250_s14 + $0x38] sm:$0xff]  ;;  %v2903_v25 = vmov 0.0   ;;  %v2913_v24 = vmov 0.0  }
  0x23   : > { %3731 = vst [vmem:[#allocation31_spill] sm:$0xff] %v2760_v26  ;;  %3732 = vst [vmem:[#allocation32_spill] sm:$0xff] %v2762_v27  ;;  %v2766_v29 = vld [vmem:[%s250_s14 + $0x40] sm:$0xff]  ;;  %v2768_v30 = vld [vmem:[%s250_s14 + $0x48] sm:$0xff]  ;;  %v2899_v27 = vmov 0.0   ;;  %v2907_v26 = vmov 0.0  }
  0x24   : > { %3733 = vst [vmem:[#allocation33_spill] sm:$0xff] %v2764_v28  ;;  %3734 = vst [vmem:[#allocation34_spill] sm:$0xff] %v2766_v29  ;;  %v2770_v31 = vld [vmem:[%s250_s14 + $0x50] sm:$0xff]  ;;  %v2772_v32 = vld [vmem:[%s250_s14 + $0x58] sm:$0xff]  ;;  %v2895_v29 = vmov 0.0   ;;  %v2901_v28 = vmov 0.0  }
  0x25   : > { %3735 = vst [vmem:[#allocation35_spill] sm:$0xff] %v2768_v30  ;;  %3736 = vst [vmem:[#allocation36_spill] sm:$0xff] %v2770_v31  ;;  %v2774_v33 = vld [vmem:[%s250_s14 + $0x60] sm:$0xff]  ;;  %v2776_v34 = vld [vmem:[%s250_s14 + $0x68] sm:$0xff]  ;;  %v2891_v31 = vmov 0.0   ;;  %v2897_v30 = vmov 0.0  }
  0x26   : > { %3737 = vst [vmem:[#allocation37_spill] sm:$0xff] %v2772_v32  ;;  %3738 = vst [vmem:[#allocation38_spill] sm:$0xff] %v2774_v33  ;;  %v2778_v35 = vld [vmem:[%s250_s14 + $0x70] sm:$0xff]  ;;  %v2780_v36 = vld [vmem:[%s250_s14 + $0x78] sm:$0xff]  ;;  %v2887_v33 = vmov 0.0   ;;  %v2893_v32 = vmov 0.0  }
  0x27   : > { %3739 = vst [vmem:[#allocation39_spill] sm:$0xff] %v2776_v34  ;;  %3740 = vst [vmem:[#allocation40_spill] sm:$0xff] %v2778_v35  ;;  %v2785_v37 = vld [vmem:[%s3669_s2 + $0x28] sm:$0xff]  ;;  %v2790_v38 = vld [vmem:[%s3669_s2 + $0x30] sm:$0xff]  ;;  %v2883_v35 = vmov 0.0   ;;  %v2889_v34 = vmov 0.0  }
  0x28   : > { %3741 = vst [vmem:[#allocation41_spill] sm:$0xff] %v2780_v36  ;;  %3742 = vst [vmem:[#allocation42_spill] sm:$0xff] %v2785_v37  ;;  %v2795_v39 = vld [vmem:[%s3669_s2 + $0x38] sm:$0xff]  ;;  %v2800_v40 = vld [vmem:[%s3669_s2 + $0x40] sm:$0xff]  ;;  %v2885_v36 = vmov 0.0  }
  0x29   : > { %3743 = vst [vmem:[#allocation43_spill] sm:$0xff] %v2790_v38  ;;  %3744 = vst [vmem:[#allocation44_spill] sm:$0xff] %v2795_v39  ;;  %v2805_v41 = vld [vmem:[%s3669_s2 + $0x48] sm:$0xff]  ;;  %v2810_v42 = vld [vmem:[%s3669_s2 + $0x50] sm:$0xff] }
  0x2a   : > { %3745 = vst [vmem:[#allocation45_spill] sm:$0xff] %v2800_v40  ;;  %3746 = vst [vmem:[#allocation46_spill] sm:$0xff] %v2805_v41  ;;  %v2815_v43 = vld [vmem:[%s3669_s2 + $0x58] sm:$0xff]  ;;  %v2820_v44 = vld [vmem:[%s3669_s2 + $0x60] sm:$0xff] }
  0x2b   : > { %3747 = vst [vmem:[#allocation47_spill] sm:$0xff] %v2810_v42  ;;  %3748 = vst [vmem:[#allocation48_spill] sm:$0xff] %v2815_v43  ;;  %v2825_v45 = vld [vmem:[%s3669_s2 + $0x68] sm:$0xff]  ;;  %v2830_v46 = vld [vmem:[%s3669_s2 + $0x70] sm:$0xff] }
  0x2c   : > { %3749 = vst [vmem:[#allocation49_spill] sm:$0xff] %v2820_v44  ;;  %3750 = vst [vmem:[#allocation50_spill] sm:$0xff] %v2825_v45  ;;  %v2835_v47 = vld [vmem:[%s3669_s2 + $0x78] sm:$0xff]  ;;  %v2840_v48 = vld [vmem:[%s3670_s3] ss:$0 sm:$0xff] }
  0x2d   : > { %3751 = vst [vmem:[#allocation51_spill] sm:$0xff] %v2830_v46  ;;  %3752 = vst [vmem:[#allocation52_spill] sm:$0xff] %v2835_v47  ;;  %v2845_v49 = vld [vmem:[%s3671_s4] ss:$0 sm:$0xff] }
  0x2e   : > { %3753 = vst [vmem:[#allocation53_spill] sm:$0xff] %v2840_v48  ;;  %3754 = vst [vmem:[#allocation54_spill] sm:$0xff] %v2845_v49  ;;  %v2850_v50 = vld [vmem:[%s3672_s5] ss:$0 sm:$0xff]  ;;  %v2881_v48 = vmov 0.0   ;;  %v2909_v49 = vmov 0.0  }
  0x2f   : > { %3755 = vst [vmem:[#allocation55_spill] sm:$0xff] %v2850_v50  ;;  %v2905_v50 = vmov 0.0  }
  0x30 LB: >> { %3756 = vst [vmem:[#allocation56_spill] sm:$0xff] %v2484_v33  ;;  %3757 = vst [vmem:[#allocation57_spill] sm:$0xff] %v2488_v34  ;;  %v3761_v0 = vld [vmem:[#allocation5_spill] sm:$0xff]  ;;  %v3762_v1 = vld [vmem:[#allocation6_spill] sm:$0xff]  ;;  %1597 = vmatprep.mubr.f32.mxu0 %v2480_v36  ;;  %s309_s11 = sadd.s32 1, %s2548_s17   ;;  %s2548_s17 = sphi %s2919_s17, %s3854_s17   ;;  %v2544_v22 = vphi %v2917_v22, %v3853_v22   ;;  %v2540_v21 = vphi %v2915_v21, %v3852_v21   ;;  %v2536_v24 = vphi %v2913_v24, %v3851_v24   ;;  %v2532_v23 = vphi %v2911_v23, %v3850_v23   ;;  %v2528_v49 = vphi %v2909_v49, %v3849_v49   ;;  %v2524_v26 = vphi %v2907_v26, %v3848_v26   ;;  %v2520_v50 = vphi %v2905_v50, %v3847_v50   ;;  %v2516_v25 = vphi %v2903_v25, %v3846_v25   ;;  %v2512_v28 = vphi %v2901_v28, %v3845_v28   ;;  %v2508_v27 = vphi %v2899_v27, %v3844_v27   ;;  %v2504_v30 = vphi %v2897_v30, %v3843_v30   ;;  %v2500_v29 = vphi %v2895_v29, %v3842_v29   ;;  %v2496_v32 = vphi %v2893_v32, %v3841_v32   ;;  %v2492_v31 = vphi %v2891_v31, %v3840_v31   ;;  %v2488_v34 = vphi %v2889_v34, %v3839_v34   ;;  %v2484_v33 = vphi %v2887_v33, %v3838_v33   ;;  %v2480_v36 = vphi %v2885_v36, %v3459_v36   ;;  %v2476_v35 = vphi %v2883_v35, %v3456_v35   ;;  %v2472_v48 = vphi %v2881_v48, %v1214_v48   ;;  %v2468_v63 = vphi %v2879_v63, %v1215_v63   ;;  %v2464_v62 = vphi %v2877_v62, %v1216_v62   ;;  %v2460_v61 = vphi %v2875_v61, %v1217_v61   ;;  %v2456_v60 = vphi %v2873_v60, %v1218_v60   ;;  %v2452_v59 = vphi %v2871_v59, %v1219_v59   ;;  %v2448_v58 = vphi %v2869_v58, %v1220_v58   ;;  %v2444_v57 = vphi %v2867_v57, %v1221_v57   ;;  %v2440_v56 = vphi %v2865_v56, %v1222_v56   ;;  %v2436_v55 = vphi %v2863_v55, %v1223_v55   ;;  %v2432_v54 = vphi %v2861_v54, %v1224_v54   ;;  %v2428_v53 = vphi %v2859_v53, %v1225_v53   ;;  %v2424_v52 = vphi %v2857_v52, %v1226_v52   ;;  %v2420_v51 = vphi %v2855_v51, %v1227_v51  }
  0x31   : >> { %3758 = vst [vmem:[#allocation58_spill] sm:$0xff] %v2492_v31  ;;  %3759 = vst [vmem:[#allocation59_spill] sm:$0xff] %v2496_v32  ;;  %v1789_v34 = vpack.c.bf16 %v3762_v1, %v3761_v0  ;;  %v3763_v2 = vld [vmem:[#allocation7_spill] sm:$0xff]  ;;  %v3764_v3 = vld [vmem:[#allocation8_spill] sm:$0xff]  ;;  %p3491_p11 = scmp.ge.s32.totalorder %s309_s11, 200   ;;  %s3854_s17 = smov %s309_s11 }
  0x32   : >> { %3760 = vst [vmem:[#allocation60_spill] sm:$0xff] %v2504_v30  ;;  %v1793_v33 = vpack.c.bf16 %v3764_v3, %v3763_v2  ;;  %v3765_v4 = vld [vmem:[#allocation9_spill] sm:$0xff]  ;;  %v3766_v5 = vld [vmem:[#allocation10_spill] sm:$0xff]  ;;  %v3767_v6 = vld [vmem:[#allocation11_spill] sm:$0xff]  ;;  %s1436_s13 = sshll.u32 (%p3491_p11), %s2609_s25, 11  ;;  %s1258_s16 = sshll.u32 (%p3491_p11), %s2853_s29, 4  ;;  %s3622_s16 = int_to_ptr.vmem [resolvable:$true] %s1258_s16 }
  0x33   : >> { %1790 = vmatprep.subr.bf16.mxu0 %v1789_v34  ;;  %v1797_v32 = vpack.c.bf16 %v3766_v5, %v3765_v4  ;;  %v3768_v7 = vld [vmem:[#allocation12_spill] sm:$0xff]  ;;  %v3769_v16 = vld [vmem:[#allocation21_spill] sm:$0xff]  ;;  %v3770_v17 = vld [vmem:[#allocation22_spill] sm:$0xff]  ;;  %s3619_s14 = scalar_lea.hbm (%p3491_p11), %s3673_s6, %s1436_s13  ;;  %s3626_s19 = scalar_lea.sflag (%p3491_p11), [#allocation3], %s243_s9 }
  0x34   : >> { %1792 = vmatpush3.bf16.msra.mxu0 %v1789_v34  ;;  %v1801_v31 = vpack.c.bf16 %v3768_v7, %v3767_v6  ;;  %v3031_v30 = vpack.c.bf16 %v3770_v17, %v3769_v16  ;;  %v3771_v18 = vld [vmem:[#allocation23_spill] sm:$0xff]  ;;  %v3772_v19 = vld [vmem:[#allocation24_spill] sm:$0xff]  ;;  %v3773_v8 = vld [vmem:[#allocation13_spill] sm:$0xff]  ;;  %s2222_s20 = scalar_lea.vmem (%p3491_p11), %s3622_s16, 2048  ;;  %s2550_s25 = smov (%p3491_p11), [#allocation2]  }
  0x35   : >> { %1794 = vmatprep.subr.bf16.mxu0 %v1793_v33  ;;  %v3035_v0 = vpack.c.bf16 %v3772_v19, %v3771_v18  ;;  %v3774_v9 = vld [vmem:[#allocation14_spill] sm:$0xff]  ;;  %v3775_v20 = vld [vmem:[#allocation25_spill] sm:$0xff]  ;;  %v3777_v10 = vld [vmem:[#allocation15_spill] sm:$0xff]  ;;  %p2223_p12 = scmp.ne.s32.totalorder (%p3491_p11), %s3622_s16, %s2222_s20  ;;  %s2226_s26 = sshll.u32 (%p3491_p11), %s2550_s25, 4  ;;  %s2227_s26 = int_to_ptr.vmem [resolvable:$false] %s2226_s26 }
  0x36   : >> { %v1805_v1 = vpack.c.bf16 %v3774_v9, %v3773_v8  ;;  %1822 = vmatprep.subr.bf16.mxu1 %v3031_v30  ;;  %v3776_v37 = vld [vmem:[#allocation42_spill] sm:$0xff]  ;;  %v3778_v11 = vld [vmem:[#allocation16_spill] sm:$0xff]  ;;  %v3779_v38 = vld [vmem:[#allocation43_spill] sm:$0xff]  ;;  %s2228_s18 = scalar_lea.vmem (%p3491_p11), %s2227_s26, 4096  ;;  %p2229_p1 = scmp.lt.s32.totalorder (%p3491_p11), %s3622_s16, %s2227_s26 }
  0x37   : >> { %1824 = vmatpush3.bf16.msra.mxu1 %v3031_v30  ;;  %v3044_v2 = vpack.c.bf16 %v3776_v37, %v3775_v20  ;;  %v1809_v3 = vpack.c.bf16 %v3778_v11, %v3777_v10  ;;  %v3780_v39 = vld [vmem:[#allocation44_spill] sm:$0xff]  ;;  %v3781_v12 = vld [vmem:[#allocation17_spill] sm:$0xff]  ;;  %v3782_v13 = vld [vmem:[#allocation18_spill] sm:$0xff]  ;;  %p2224_p13 = pnand (%p3491_p11), %p2223_p12, %p2626_p5  ;;  %p2230_p2 = scmp.lt.s32.totalorder (%p3491_p11), %s2228_s18, %s2222_s20 }
  0x38   : >> { %1796 = vmatpush3.bf16.msra.mxu0 %v1793_v33  ;;  %1826 = vmatprep.subr.bf16.mxu1 %v3035_v0  ;;  %v3052_v4 = vpack.c.bf16 %v3780_v39, %v3779_v38  ;;  %v1813_v5 = vpack.c.bf16 %v3782_v13, %v3781_v12  ;;  %v3783_v40 = vld [vmem:[#allocation45_spill] sm:$0xff]  ;;  %v3784_v41 = vld [vmem:[#allocation46_spill] sm:$0xff]  ;;  %v3785_v14 = vld [vmem:[#allocation19_spill] sm:$0xff] }
  0x39   : >> { %1798 = vmatprep.subr.bf16.mxu0 %v1797_v32  ;;  %v3060_v6 = vpack.c.bf16 %v3784_v41, %v3783_v40  ;;  %v3786_v15 = vld [vmem:[#allocation20_spill] sm:$0xff]  ;;  %v3787_v42 = vld [vmem:[#allocation47_spill] sm:$0xff]  ;;  %v3789_v44 = vld [vmem:[#allocation49_spill] sm:$0xff]  ;;  %p2225_p0 = pneg (%p3491_p11), %p2224_p13  ;;  %p2231_p3 = por (%p3491_p11), %p2230_p2, %p2229_p1 }
  0x3a   : >> { %v1817_v7 = vpack.c.bf16 %v3786_v15, %v3785_v14  ;;  %v3788_v43 = vld [vmem:[#allocation48_spill] sm:$0xff]  ;;  %v3790_v45 = vld [vmem:[#allocation50_spill] sm:$0xff]  ;;  %v3791_v46 = vld [vmem:[#allocation51_spill] sm:$0xff] }
  0x3b   : >> { %1828 = vmatpush3.bf16.msra.mxu1 %v3035_v0  ;;  %v3792_v47 = vld [vmem:[#allocation52_spill] sm:$0xff]  ;;  %v3796_v11 = vld [vmem:[#allocation29_spill] sm:$0xff]  ;;  %v3798_v16 = vld [vmem:[#allocation54_spill] sm:$0xff]  ;;  %p2232_p4 = pnand (%p3491_p11), %p2231_p3, %p2225_p0 }
  0x3c   : >> { %1800 = vmatpush3.bf16.msra.mxu0 %v1797_v32  ;;  %1830 = vmatprep.subr.bf16.mxu1 %v3044_v2  ;;  %v490_v12 = vsub.f32 %v2532_v23, %v3796_v11  ;;  %v3797_v14 = vld [vmem:[#allocation28_spill] sm:$0xff]  ;;  %v3799_v20 = vld [vmem:[#allocation31_spill] sm:$0xff] }
  0x3d   : >> { %1802 = vmatprep.subr.bf16.mxu0 %v1801_v31  ;;  %v489_v15 = vsub.f32 %v2536_v24, %v3797_v14  ;;  %v492_v37 = vsub.f32 %v2524_v26, %v3799_v20  ;;  %v3800_v38 = vld [vmem:[#allocation55_spill] sm:$0xff] }
  0x3f   : >> { %1832 = vmatpush3.bf16.msra.mxu1 %v3044_v2 }
  0x40   : >> { %1804 = vmatpush3.bf16.msra.mxu0 %v1801_v31  ;;  %1834 = vmatprep.subr.bf16.mxu1 %v3052_v4 }
  0x41   : >> { %1806 = vmatprep.subr.bf16.mxu0 %v1805_v1 }
  0x43   : >> { %1836 = vmatpush3.bf16.msra.mxu1 %v3052_v4 }
  0x44   : >> { %1808 = vmatpush3.bf16.msra.mxu0 %v1805_v1  ;;  %1838 = vmatprep.subr.bf16.mxu1 %v3060_v6 }
  0x45   : >> { %1810 = vmatprep.subr.bf16.mxu0 %v1809_v3 }
  0x47   : >> { %1840 = vmatpush3.bf16.msra.mxu1 %v3060_v6 }
  0x48   : >> { %1812 = vmatpush3.bf16.msra.mxu0 %v1809_v3 }
  0x49   : >> { %1814 = vmatprep.subr.bf16.mxu0 %v1813_v5 }
  0x4c   : >> { %1816 = vmatpush3.bf16.msra.mxu0 %v1813_v5 }
  0x4d   : >> { %1818 = vmatprep.subr.bf16.mxu0 %v1817_v7 }
  0x50   : >> { %1820 = vmatpush3.bf16.msra.mxu0 %v1817_v7 }
  0x51   : >> { %1854 = vmatprep.subr.bf16.mxu0 %v1789_v34 }
  0x53   : >> { %1598 = vmatmul.mubr.f32.vlgmr.msra.gmra.mrb[0].mxu0 %v2476_v35 }
  0x54   : >> { %1600 = vmatprep.mubr.f32.mxu0 %v2472_v48  ;;  %1856 = vmatpush3.bf16.msra.mxu0 %v1789_v34 }
  0x55   : >> { %1858 = vmatprep.subr.bf16.mxu0 %v1793_v33 }
  0x57   : >> { %1601 = vmatmul.mubr.f32.gmra.mrb[2].mxu0 %v2468_v63 }
  0x58   : >> { %1603 = vmatprep.mubr.f32.mxu0 %v2464_v62  ;;  %1860 = vmatpush3.bf16.msra.mxu0 %v1793_v33 }
  0x59   : >> { %1862 = vmatprep.subr.bf16.mxu0 %v1797_v32 }
  0x5b   : >> { %1604 = vmatmul.mubr.f32.gmra.mrb[4].mxu0 %v2460_v61 }
  0x5c   : >> { %1606 = vmatprep.mubr.f32.mxu0 %v2456_v60  ;;  %1864 = vmatpush3.bf16.msra.mxu0 %v1797_v32  ;;  %v3794_v32 = vld [vmem:[#allocation26_spill] sm:$0xff] }
  0x5d   : >> { %1866 = vmatprep.subr.bf16.mxu0 %v1801_v31  ;;  %v3795_v8 = vmov %v3794_v32  ;;  %v487_v33 = vsub.f32 %v2544_v22, %v3794_v32 }
  0x5f   : >> { %1607 = vmatmul.mubr.f32.gmra.mrb[6].mxu0 %v2452_v59 }
  0x60   : >> { %1609 = vmatprep.mubr.f32.mxu0 %v2448_v58  ;;  %1868 = vmatpush3.bf16.msra.mxu0 %v1801_v31  ;;  %v3084_v31 = vpack.c.bf16 %v3788_v43, %v3787_v42  ;;  %v3802_v42 = vld [vmem:[#allocation33_spill] sm:$0xff] }
  0x61   : >> { %1870 = vmatprep.subr.bf16.mxu0 %v1805_v1 }
  0x62   : >> { %1842 = vmatprep.subr.bf16.mxu1 %v3084_v31 }
  0x63   : >> { %1610 = vmatmul.mubr.f32.gmra.mrb[8].mxu0 %v2444_v57  ;;  %1844 = vmatpush3.bf16.msra.mxu1 %v3084_v31 }
  0x64   : >> { %1612 = vmatprep.mubr.f32.mxu0 %v2440_v56  ;;  %1872 = vmatpush3.bf16.msra.mxu0 %v1805_v1  ;;  %v3090_v1 = vpack.c.bf16 %v3790_v45, %v3789_v44 }
  0x65   : >> { %1874 = vmatprep.subr.bf16.mxu0 %v1809_v3 }
  0x66   : >> { %1846 = vmatprep.subr.bf16.mxu1 %v3090_v1 }
  0x67   : >> { %1613 = vmatmul.mubr.f32.gmra.mrb[10].mxu0 %v2436_v55  ;;  %1848 = vmatpush3.bf16.msra.mxu1 %v3090_v1 }
  0x68   : >> { %1615 = vmatprep.mubr.f32.mxu0 %v2432_v54  ;;  %1876 = vmatpush3.bf16.msra.mxu0 %v1809_v3  ;;  %v3096_v3 = vpack.c.bf16 %v3792_v47, %v3791_v46 }
  0x69   : >> { %1878 = vmatprep.subr.bf16.mxu0 %v1813_v5 }
  0x6a   : >> { %1850 = vmatprep.subr.bf16.mxu1 %v3096_v3 }
  0x6b   : >> { %1616 = vmatmul.mubr.f32.gmra.mrb[12].mxu0 %v2428_v53  ;;  %1852 = vmatpush3.bf16.msra.mxu1 %v3096_v3 }
  0x6c   : >> { %1618 = vmatprep.mubr.f32.mxu0 %v2424_v52  ;;  %1880 = vmatpush3.bf16.msra.mxu0 %v1813_v5  ;;  %v3793_v5 = vld [vmem:[#allocation27_spill] sm:$0xff] }
  0x6d   : >> { %1882 = vmatprep.subr.bf16.mxu0 %v1817_v7  ;;  %1886 = vmatprep.subr.bf16.mxu1 %v3031_v30 }
  0x6f   : >> { %1619 = vmatmul.mubr.f32.gmra.mrb[14].mxu0 %v2420_v51 }
  0x70   : >> { %1884 = vmatpush3.bf16.msra.mxu0 %v1817_v7  ;;  %v488_v7 = vsub.f32 %v2540_v21, %v3793_v5 }
 0x126   : >> { %v1599_v34 = vpop.f32.mrb[0].mxu0 }
 0x127   : >> { %v504_v9 = vsub.f32 %v488_v7, %v1599_v34  ;;  %v408_v10 = vpop.f32.mrb[1].mxu0 }
 0x128   : >> { %v503_v13 = vsub.f32 %v487_v33, %v408_v10  ;;  %v3801_v33 = vld [vmem:[#allocation30_spill] sm:$0xff] }
 0x129   : >> { %v526_v17 = vmax.f32 %v3798_v16, %v504_v9  ;;  %v491_v41 = vsub.f32 %v2528_v49, %v3801_v33 }
 0x12a   : >> { %v525_v18 = vmax.f32 %v3798_v16, %v503_v13  ;;  %v1602_v19 = vpop.f32.mrb[2].mxu0  ;;  %v494_v13 = vsub.f32 %v2516_v25, %v3802_v42 }
 0x12b   : >> { %v3114_v32 = vmin.f32 %v3800_v38, %v526_v17  ;;  %v506_v7 = vsub.f32 %v490_v12, %v1602_v19  ;;  %v418_v34 = vpop.f32.mrb[3].mxu0  ;;  %v3803_v19 = vld [vmem:[#allocation32_spill] sm:$0xff] }
 0x12c   : >> { %v3117_v39 = vmin.f32 %v3800_v38, %v525_v18  ;;  %v505_v10 = vsub.f32 %v489_v15, %v418_v34  ;;  %v493_v18 = vsub.f32 %v2520_v50, %v3803_v19 }
 0x12d   : >> { %v528_v9 = vmax.f32 %v3798_v16, %v506_v7  ;;  %v564_v43 = vmul.f32 2.0, %v3114_v32 }
 0x12e   : >> { %v527_v44 = vmax.f32 %v3798_v16, %v505_v10  ;;  %v1605_v17 = vpop.f32.mrb[4].mxu0  ;;  %v563_v12 = vmul.f32 2.0, %v3117_v39 }
 0x12f   : >> { %v3130_v15 = vmin.f32 %v3800_v38, %v528_v9  ;;  %v508_v34 = vsub.f32 %v492_v37, %v1605_v17  ;;  %v428_v33 = vpop.f32.mrb[5].mxu0  ;;  %v580_v10 = vsub.f32 %v564_v43, %v2540_v21  ;;  %v3804_v9 = vld [vmem:[#allocation35_spill] sm:$0xff] }
 0x130   : >> { %v3133_v7 = vmin.f32 %v3800_v38, %v527_v44  ;;  %v507_v45 = vsub.f32 %v491_v41, %v428_v33  ;;  %v579_v46 = vsub.f32 %v563_v12, %v2544_v22  ;;  %v496_v37 = vsub.f32 %v2508_v27, %v3804_v9  ;;  %v3805_v44 = vld [vmem:[#allocation34_spill] sm:$0xff] }
 0x131   : >> { %v530_v47 = vmax.f32 %v3798_v16, %v508_v34  ;;  %v566_v42 = vmul.f32 2.0, %v3130_v15  ;;  %v495_v41 = vsub.f32 %v2512_v28, %v3805_v44 }
 0x132   : >> { %v529_v40 = vmax.f32 %v3798_v16, %v507_v45  ;;  %v1608_v19 = vpop.f32.mrb[6].mxu0  ;;  %1653 = vmatprep.mubr.f32.mxu1 %v579_v46  ;;  %v565_v17 = vmul.f32 2.0, %v3133_v7 }
 0x133   : >> { %v3146_v22 = vmin.f32 %v3800_v38, %v530_v47  ;;  %v510_v12 = vsub.f32 %v494_v13, %v1608_v19  ;;  %v438_v34 = vpop.f32.mrb[7].mxu0  ;;  %1654 = vmatmul.mubr.f32.vlgmr.msra.gmra.mrb[0].mxu1 %v580_v10  ;;  %v582_v33 = vsub.f32 %v566_v42, %v2532_v23  ;;  %v3806_v19 = vld [vmem:[#allocation37_spill] sm:$0xff]  ;;  %v3807_v23 = vld [vmem:[#allocation36_spill] sm:$0xff] }
 0x134   : >> { %v3149_v21 = vmin.f32 %v3800_v38, %v529_v40  ;;  %v509_v43 = vsub.f32 %v493_v18, %v438_v34  ;;  %v581_v45 = vsub.f32 %v565_v17, %v2536_v24  ;;  %1888 = vmatpush3.bf16.msra.mxu1 %v3031_v30  ;;  %v498_v40 = vsub.f32 %v2500_v29, %v3806_v19  ;;  %v3808_v17 = vld [vmem:[#allocation60_spill] sm:$0xff] }
 0x135   : >> { %v532_v46 = vmax.f32 %v3798_v16, %v510_v12  ;;  %v568_v44 = vmul.f32 2.0, %v3146_v22  ;;  %1890 = vmatprep.subr.bf16.mxu1 %v3035_v0  ;;  %v497_v12 = vsub.f32 %v3808_v17, %v3807_v23 }
 0x136   : >> { %v531_v47 = vmax.f32 %v3798_v16, %v509_v43  ;;  %v1611_v13 = vpop.f32.mrb[8].mxu0  ;;  %1656 = vmatprep.mubr.f32.mxu1 %v581_v45  ;;  %v567_v18 = vmul.f32 2.0, %v3149_v21 }
 0x137   : >> { %v3162_v24 = vmin.f32 %v3800_v38, %v532_v46  ;;  %v512_v30 = vsub.f32 %v496_v37, %v1611_v13  ;;  %v448_v10 = vpop.f32.mrb[9].mxu0  ;;  %1657 = vmatmul.mubr.f32.gmra.mrb[2].mxu1 %v582_v33  ;;  %v584_v9 = vsub.f32 %v568_v44, %v2524_v26  ;;  %v3811_v26 = vld [vmem:[#allocation38_spill] sm:$0xff] }
 0x138   : >> { %v3167_v34 = vmin.f32 %v3800_v38, %v531_v47  ;;  %v511_v43 = vsub.f32 %v495_v41, %v448_v10  ;;  %v583_v45 = vsub.f32 %v567_v18, %v2528_v49  ;;  %1892 = vmatpush3.bf16.msra.mxu1 %v3035_v0  ;;  %v3809_v0 = vld [vmem:[#allocation39_spill] sm:$0xff]  ;;  %v3810_v18 = vld [vmem:[#allocation58_spill] sm:$0xff] }
 0x139   : >> { %v534_v19 = vmax.f32 %v3798_v16, %v512_v30  ;;  %v570_v46 = vmul.f32 2.0, %v3162_v24  ;;  %1894 = vmatprep.subr.bf16.mxu1 %v3044_v2  ;;  %v500_v30 = vsub.f32 %v3810_v18, %v3809_v0  ;;  %v3812_v10 = vld [vmem:[#allocation59_spill] sm:$0xff]  ;;  %v3816_v0 = vld [vmem:[#allocation57_spill] sm:$0xff] }
 0x13a   : >> { %v533_v37 = vmax.f32 %v3798_v16, %v511_v43  ;;  %v1614_v33 = vpop.f32.mrb[10].mxu0  ;;  %1659 = vmatprep.mubr.f32.mxu1 %v583_v45  ;;  %v569_v47 = vmul.f32 2.0, %v3167_v34  ;;  %v499_v23 = vsub.f32 %v3812_v10, %v3811_v26 }
 0x13b   : >> { %v3178_v41 = vmin.f32 %v3800_v38, %v534_v19  ;;  %v514_v49 = vsub.f32 %v498_v40, %v1614_v33  ;;  %v458_v13 = vpop.f32.mrb[11].mxu0  ;;  %1660 = vmatmul.mubr.f32.gmra.mrb[4].mxu1 %v584_v9  ;;  %v586_v40 = vsub.f32 %v570_v46, %v2516_v25 }
 0x13c   : >> { %v3185_v42 = vmin.f32 %v3800_v38, %v533_v37  ;;  %v513_v43 = vsub.f32 %v497_v12, %v458_v13  ;;  %v585_v45 = vsub.f32 %v569_v47, %v2520_v50  ;;  %1896 = vmatpush3.bf16.msra.mxu1 %v3044_v2  ;;  %v3813_v2 = vld [vmem:[#allocation41_spill] sm:$0xff] }
 0x13d   : >> { %v536_v19 = vmax.f32 %v3798_v16, %v514_v49  ;;  %v572_v9 = vmul.f32 2.0, %v3178_v41  ;;  %1898 = vmatprep.subr.bf16.mxu1 %v3052_v4  ;;  %v3814_v49 = vld [vmem:[#allocation56_spill] sm:$0xff] }
 0x13e   : >> { %v535_v33 = vmax.f32 %v3798_v16, %v513_v43  ;;  %v1617_v44 = vpop.f32.mrb[12].mxu0  ;;  %1662 = vmatprep.mubr.f32.mxu1 %v585_v45  ;;  %v571_v37 = vmul.f32 2.0, %v3185_v42  ;;  %v502_v13 = vsub.f32 %v3814_v49, %v3813_v2  ;;  %v3815_v43 = vld [vmem:[#allocation40_spill] sm:$0xff] }
 0x13f   : >> { %v3196_v12 = vmin.f32 %v3800_v38, %v536_v19  ;;  %v516_v50 = vsub.f32 %v500_v30, %v1617_v44  ;;  %v468_v47 = vpop.f32.mrb[13].mxu0  ;;  %1663 = vmatmul.mubr.f32.gmra.mrb[6].mxu1 %v586_v40  ;;  %v501_v45 = vsub.f32 %v3816_v0, %v3815_v43  ;;  %v588_v30 = vsub.f32 %v572_v9, %v2508_v27 }
 0x140   : >> { %v3201_v25 = vmin.f32 %v3800_v38, %v535_v33  ;;  %v515_v46 = vsub.f32 %v499_v23, %v468_v47  ;;  %v587_v26 = vsub.f32 %v571_v37, %v2512_v28  ;;  %1900 = vmatpush3.bf16.msra.mxu1 %v3052_v4 }
 0x141   : >> { %v538_v19 = vmax.f32 %v3798_v16, %v516_v50  ;;  %v574_v44 = vmul.f32 2.0, %v3196_v12  ;;  %1902 = vmatprep.subr.bf16.mxu1 %v3060_v6 }
 0x142   : >> { %v537_v40 = vmax.f32 %v3798_v16, %v515_v46  ;;  %v1620_v33 = vpop.f32.mrb[14].mxu0  ;;  %1665 = vmatprep.mubr.f32.mxu1 %v587_v26  ;;  %v573_v23 = vmul.f32 2.0, %v3201_v25 }
 0x143   : >> { %v3214_v28 = vmin.f32 %v3800_v38, %v538_v19  ;;  %v518_v37 = vsub.f32 %v502_v13, %v1620_v33  ;;  %v478_v47 = vpop.f32.mrb[15].mxu0  ;;  %1666 = vmatmul.mubr.f32.gmra.mrb[8].mxu1 %v588_v30  ;;  %v590_v46 = vsub.f32 %v574_v44, %v2500_v29 }
 0x144   : >> { %v3217_v4 = vmin.f32 %v3800_v38, %v537_v40  ;;  %v517_v27 = vsub.f32 %v501_v45, %v478_v47  ;;  %v589_v9 = vsub.f32 %v573_v23, %v3808_v17  ;;  %1904 = vmatpush3.bf16.msra.mxu1 %v3060_v6 }
 0x145   : >> { %v540_v50 = vmax.f32 %v3798_v16, %v518_v37  ;;  %v576_v26 = vmul.f32 2.0, %v3214_v28  ;;  %1906 = vmatprep.subr.bf16.mxu1 %v3084_v31  ;;  %v3817_v37 = vld [vmem:[#allocation53_spill] sm:$0xff] }
 0x146   : >> { %v539_v13 = vmax.f32 %v3798_v16, %v517_v27  ;;  %1668 = vmatprep.mubr.f32.mxu1 %v589_v9  ;;  %v575_v19 = vmul.f32 2.0, %v3217_v4 }
 0x147   : >> { %v3228_v30 = vmin.f32 %v3800_v38, %v540_v50  ;;  %1669 = vmatmul.mubr.f32.gmra.mrb[10].mxu1 %v590_v46  ;;  %v592_v29 = vsub.f32 %v576_v26, %v3810_v18 }
 0x148   : >> { %v3231_v17 = vmin.f32 %v3800_v38, %v539_v13  ;;  %v591_v6 = vsub.f32 %v575_v19, %v3812_v10  ;;  %1908 = vmatpush3.bf16.msra.mxu1 %v3084_v31 }
 0x149   : >> { %v578_v45 = vmul.f32 2.0, %v3228_v30  ;;  %1910 = vmatprep.subr.bf16.mxu1 %v3090_v1 }
 0x14a   : >> { %1671 = vmatprep.mubr.f32.mxu1 %v591_v6  ;;  %v577_v44 = vmul.f32 2.0, %v3231_v17 }
 0x14b   : >> { %1672 = vmatmul.mubr.f32.gmra.mrb[12].mxu1 %v592_v29  ;;  %v594_v33 = vsub.f32 %v578_v45, %v3814_v49 }
 0x14c   : >> { %v593_v40 = vsub.f32 %v577_v44, %v3816_v0  ;;  %1912 = vmatpush3.bf16.msra.mxu1 %v3090_v1 }
 0x14d   : >> { %1914 = vmatprep.subr.bf16.mxu1 %v3096_v3 }
 0x14e   : >> { %1674 = vmatprep.mubr.f32.mxu1 %v593_v40 }
 0x14f   : >> { %1675 = vmatmul.mubr.f32.gmra.mrb[14].mxu1 %v594_v33 }
 0x150   : >> { %1916 = vmatpush3.bf16.msra.mxu1 %v3096_v3 }
 0x206   : >> { %v1655_v31 = vpop.f32.mrb[0].mxu1 }
 0x207   : >> { %v741_v18 = vadd.f32 %v2476_v35, %v1655_v31  ;;  %v661_v10 = vpop.f32.mrb[1].mxu1 }
 0x208   : >> { %v740_v23 = vadd.f32 %v2480_v36, %v661_v10 }
 0x209   : >> { %v763_v47 = vsub.f32 %v741_v18, %v3817_v37 }
 0x20a   : >> { %v762_v0 = vsub.f32 %v740_v23, %v3817_v37  ;;  %v1658_v27 = vpop.f32.mrb[2].mxu1 }
 0x20b   : >> { %v743_v1 = vadd.f32 %v2468_v63, %v1658_v27  ;;  %v671_v49 = vpop.f32.mrb[3].mxu1  ;;  %v3252_v46 = vmax.f32 %v763_v47, 0.0 }
 0x20c   : >> { %v3249_v9 = vmax.f32 %v762_v0, 0.0  ;;  %v742_v50 = vadd.f32 %v2472_v48, %v671_v49 }
 0x20d   : >> { %v765_v3 = vsub.f32 %v743_v1, %v3817_v37 }
 0x20e   : >> { %v764_v35 = vsub.f32 %v742_v50, %v3817_v37  ;;  %v1661_v26 = vpop.f32.mrb[4].mxu1  ;;  %1709 = vmatprep.mubr.f32.mxu0 %v3249_v9 }
 0x20f   : >> { %v745_v36 = vadd.f32 %v2460_v61, %v1661_v26  ;;  %v681_v13 = vpop.f32.mrb[5].mxu1  ;;  %1710 = vmatmul.mubr.f32.vlgmr.msra.gmra.mrb[16].mxu0 %v3252_v46  ;;  %v3262_v6 = vmax.f32 %v765_v3, 0.0 }
 0x210   : >> { %v3259_v63 = vmax.f32 %v764_v35, 0.0  ;;  %v744_v19 = vadd.f32 %v2464_v62, %v681_v13 }
 0x211   : >> { %v767_v48 = vsub.f32 %v745_v36, %v3817_v37 }
 0x212   : >> { %v766_v29 = vsub.f32 %v744_v19, %v3817_v37  ;;  %v1664_v45 = vpop.f32.mrb[6].mxu1  ;;  %1712 = vmatprep.mubr.f32.mxu0 %v3259_v63 }
 0x213   : >> { %v747_v44 = vadd.f32 %v2452_v59, %v1664_v45  ;;  %v691_v40 = vpop.f32.mrb[7].mxu1  ;;  %1713 = vmatmul.mubr.f32.gmra.mrb[18].mxu0 %v3262_v6  ;;  %v3272_v31 = vmax.f32 %v767_v48, 0.0 }
 0x214   : >> { %v3269_v61 = vmax.f32 %v766_v29, 0.0  ;;  %v746_v33 = vadd.f32 %v2456_v60, %v691_v40 }
 0x215   : >> { %v769_v62 = vsub.f32 %v747_v44, %v3817_v37 }
 0x216   : >> { %v768_v18 = vsub.f32 %v746_v33, %v3817_v37  ;;  %v1667_v10 = vpop.f32.mrb[8].mxu1  ;;  %1715 = vmatprep.mubr.f32.mxu0 %v3269_v61 }
 0x217   : >> { %v749_v23 = vadd.f32 %v2444_v57, %v1667_v10  ;;  %v701_v47 = vpop.f32.mrb[9].mxu1  ;;  %1716 = vmatmul.mubr.f32.gmra.mrb[20].mxu0 %v3272_v31  ;;  %v3282_v27 = vmax.f32 %v769_v62, 0.0 }
 0x218   : >> { %v3279_v59 = vmax.f32 %v768_v18, 0.0  ;;  %v748_v0 = vadd.f32 %v2448_v58, %v701_v47 }
 0x219   : >> { %v771_v60 = vsub.f32 %v749_v23, %v3817_v37 }
 0x21a   : >> { %v770_v1 = vsub.f32 %v748_v0, %v3817_v37  ;;  %v1670_v49 = vpop.f32.mrb[10].mxu1  ;;  %1718 = vmatprep.mubr.f32.mxu0 %v3279_v59 }
 0x21b   : >> { %v751_v50 = vadd.f32 %v2436_v55, %v1670_v49  ;;  %v711_v3 = vpop.f32.mrb[11].mxu1  ;;  %1719 = vmatmul.mubr.f32.gmra.mrb[22].mxu0 %v3282_v27  ;;  %v3292_v26 = vmax.f32 %v771_v60, 0.0  ;;  %v939_v60 = vsub.f32 %v3117_v39, %v3795_v8 }
 0x21c   : >> { %v3289_v57 = vmax.f32 %v770_v1, 0.0  ;;  %v750_v35 = vadd.f32 %v2440_v56, %v711_v3 }
 0x21d   : >> { %v773_v58 = vsub.f32 %v751_v50, %v3817_v37 }
 0x21e   : >> { %v772_v36 = vsub.f32 %v750_v35, %v3817_v37  ;;  %v1673_v13 = vpop.f32.mrb[12].mxu1  ;;  %1721 = vmatprep.mubr.f32.mxu0 %v3289_v57  ;;  %v942_v35 = vsub.f32 %v3130_v15, %v3796_v11 }
 0x21f   : >> { %v753_v19 = vadd.f32 %v2428_v53, %v1673_v13  ;;  %v721_v48 = vpop.f32.mrb[13].mxu1  ;;  %1722 = vmatmul.mubr.f32.gmra.mrb[24].mxu0 %v3292_v26  ;;  %v3302_v45 = vmax.f32 %v773_v58, 0.0  ;;  %v941_v13 = vsub.f32 %v3133_v7, %v3797_v14 }
 0x220   : >> { %v3299_v55 = vmax.f32 %v772_v36, 0.0  ;;  %v752_v29 = vadd.f32 %v2432_v54, %v721_v48 }
 0x221   : >> { %v775_v56 = vsub.f32 %v753_v19, %v3817_v37 }
 0x222   : >> { %v774_v44 = vsub.f32 %v752_v29, %v3817_v37  ;;  %v1676_v40 = vpop.f32.mrb[14].mxu1  ;;  %1724 = vmatprep.mubr.f32.mxu0 %v3299_v55 }
 0x223   : >> { %v755_v33 = vadd.f32 %v2420_v51, %v1676_v40  ;;  %v731_v62 = vpop.f32.mrb[15].mxu1  ;;  %1725 = vmatmul.mubr.f32.gmra.mrb[26].mxu0 %v3302_v45  ;;  %v3312_v10 = vmax.f32 %v775_v56, 0.0 }
 0x224   : >> { %v3309_v53 = vmax.f32 %v774_v44, 0.0  ;;  %v754_v18 = vadd.f32 %v2424_v52, %v731_v62  ;;  %v940_v52 = vsub.f32 %v3114_v32, %v3793_v5 }
 0x225   : >> { %v777_v54 = vsub.f32 %v755_v33, %v3817_v37 }
 0x226   : >> { %v776_v23 = vsub.f32 %v754_v18, %v3817_v37  ;;  %1727 = vmatprep.mubr.f32.mxu0 %v3309_v53  ;;  %v944_v18 = vsub.f32 %v3146_v22, %v3799_v20 }
 0x227   : >> { %1728 = vmatmul.mubr.f32.gmra.mrb[28].mxu0 %v3312_v10  ;;  %v3320_v51 = vmax.f32 %v777_v54, 0.0 }
 0x228   : >> { %v3318_v47 = vmax.f32 %v776_v23, 0.0 }
 0x22a   : >> { %1730 = vmatprep.mubr.f32.mxu0 %v3318_v47 }
 0x22b   : >> { %1731 = vmatmul.mubr.f32.gmra.mrb[30].mxu0 %v3320_v51 }
 0x2e2   : >> { %v1711_v0 = vpop.f32.mrb[16].mxu0 }
 0x2e3   : >> { %v956_v1 = vsub.f32 %v940_v52, %v1711_v0  ;;  %v860_v49 = vpop.f32.mrb[17].mxu0  ;;  %v3819_v0 = vld [vmem:[#allocation30_spill] sm:$0xff] }
 0x2e4   : >> { %v955_v50 = vsub.f32 %v939_v60, %v860_v49  ;;  %v943_v60 = vsub.f32 %v3149_v21, %v3819_v0 }
 0x2e5   : >> { %v972_v3 = vmax.f32 %v3798_v16, %v956_v1 }
 0x2e6   : >> { %v971_v58 = vmax.f32 %v3798_v16, %v955_v50  ;;  %v1714_v36 = vpop.f32.mrb[18].mxu0 }
 0x2e7   : >> { %v3335_v19 = vmin.f32 %v3800_v38, %v972_v3   ;;  %v958_v48 = vsub.f32 %v942_v35, %v1714_v36  ;;  %v870_v29 = vpop.f32.mrb[19].mxu0 }
 0x2e8   : >> { %v3338_v56 = vmin.f32 %v3800_v38, %v971_v58   ;;  %v957_v40 = vsub.f32 %v941_v13, %v870_v29  ;;  %v3820_v29 = vld [vmem:[#allocation33_spill] sm:$0xff] }
 0x2e9   : >> { %v1004_v33 = vmul.f32 2.0, %v3335_v19  ;;  %v974_v62 = vmax.f32 %v3798_v16, %v958_v48  ;;  %1229 = vst [vmem:[%s2853_s29 + $0x8] sm:$0xff] (%p3491_p11), %v3335_v19 }
 0x2ea   : >> { %v3818_v44 = vmov %v3338_v56  ;;  %v973_v23 = vmax.f32 %v3798_v16, %v957_v40  ;;  %v1717_v52 = vpop.f32.mrb[20].mxu0  ;;  %v946_v56 = vsub.f32 %v3162_v24, %v3820_v29 }
 0x2eb   : >> { %v1003_v54 = vmul.f32 2.0, %v3818_v44  ;;  %v3349_v1 = vmin.f32 %v3800_v38, %v974_v62   ;;  %v960_v49 = vsub.f32 %v944_v18, %v1717_v52  ;;  %v880_v50 = vpop.f32.mrb[21].mxu0  ;;  %v1020_v36 = vsub.f32 %v1004_v33, %v3114_v32  ;;  %1228 = vst [vmem:[%s2853_s29] sm:$0xff] (%p3491_p11), %v3818_v44 }
 0x2ec   : >> { %v3352_v3 = vmin.f32 %v3800_v38, %v973_v23   ;;  %v959_v35 = vsub.f32 %v943_v60, %v880_v50  ;;  %v3821_v23 = vld [vmem:[#allocation32_spill] sm:$0xff] }
 0x2ed   : >> { %v1019_v58 = vsub.f32 %v1003_v54, %v3117_v39  ;;  %v1006_v13 = vmul.f32 2.0, %v3349_v1  ;;  %v976_v48 = vmax.f32 %v3798_v16, %v960_v49  ;;  %v945_v52 = vsub.f32 %v3167_v34, %v3821_v23  ;;  %1231 = vst [vmem:[%s2853_s29 + $0x18] sm:$0xff] (%p3491_p11), %v3349_v1 }
 0x2ee   : >> { %v1005_v40 = vmul.f32 2.0, %v3352_v3  ;;  %v975_v62 = vmax.f32 %v3798_v16, %v959_v35  ;;  %v1720_v18 = vpop.f32.mrb[22].mxu0  ;;  %1230 = vst [vmem:[%s2853_s29 + $0x10] sm:$0xff] (%p3491_p11), %v3352_v3 }
 0x2ef   : >> { %1765 = vmatprep.mubr.f32.mxu1 %v1019_v58  ;;  %v3365_v39 = vmin.f32 %v3800_v38, %v976_v48   ;;  %v962_v32 = vsub.f32 %v946_v56, %v1720_v18  ;;  %v890_v33 = vpop.f32.mrb[23].mxu0  ;;  %v3823_v58 = vld [vmem:[#allocation35_spill] sm:$0xff]  ;;  %v1022_v23 = vsub.f32 %v1006_v13, %v3130_v15 }
 0x2f0   : >> { %1766 = vmatmul.mubr.f32.vlgmr.msra.gmra.mrb[16].mxu1 %v1020_v36  ;;  %v3368_v49 = vmin.f32 %v3800_v38, %v975_v62   ;;  %v961_v54 = vsub.f32 %v945_v52, %v890_v33  ;;  %v1021_v60 = vsub.f32 %v1005_v40, %v3133_v7  ;;  %v948_v29 = vsub.f32 %v3178_v41, %v3823_v58  ;;  %v3824_v62 = vld [vmem:[#allocation34_spill] sm:$0xff] }
 0x2f1   : >> { %v1008_v50 = vmul.f32 2.0, %v3365_v39  ;;  %v978_v35 = vmax.f32 %v3798_v16, %v962_v32  ;;  %1233 = vst [vmem:[%s2853_s29 + $0x28] sm:$0xff] (%p3491_p11), %v3365_v39 }
 0x2f2   : >> { %v3822_v0 = vmov %v3368_v49  ;;  %v977_v56 = vmax.f32 %v3798_v16, %v961_v54  ;;  %v1723_v36 = vpop.f32.mrb[24].mxu0  ;;  %1768 = vmatprep.mubr.f32.mxu1 %v1021_v60  ;;  %v947_v49 = vsub.f32 %v3185_v42, %v3824_v62  ;;  %v3826_v54 = vld [vmem:[#allocation37_spill] sm:$0xff] }
 0x2f3   : >> { %v1007_v48 = vmul.f32 2.0, %v3822_v0  ;;  %v3381_v7 = vmin.f32 %v3800_v38, %v978_v35   ;;  %v964_v40 = vsub.f32 %v948_v29, %v1723_v36  ;;  %v900_v18 = vpop.f32.mrb[25].mxu0  ;;  %v950_v60 = vsub.f32 %v3196_v12, %v3826_v54  ;;  %1232 = vst [vmem:[%s2853_s29 + $0x20] sm:$0xff] (%p3491_p11), %v3822_v0 }
 0x2f4   : >> { %1769 = vmatmul.mubr.f32.gmra.mrb[18].mxu1 %v1022_v23  ;;  %v3384_v52 = vmin.f32 %v3800_v38, %v977_v56   ;;  %v963_v32 = vsub.f32 %v947_v49, %v900_v18  ;;  %v1024_v58 = vsub.f32 %v1008_v50, %v3146_v22  ;;  %v3827_v56 = vld [vmem:[#allocation36_spill] sm:$0xff] }
 0x2f5   : >> { %v1023_v15 = vsub.f32 %v1007_v48, %v3149_v21  ;;  %v1010_v13 = vmul.f32 2.0, %v3381_v7  ;;  %v980_v33 = vmax.f32 %v3798_v16, %v964_v40  ;;  %v949_v36 = vsub.f32 %v3201_v25, %v3827_v56  ;;  %1235 = vst [vmem:[%s2853_s29 + $0x38] sm:$0xff] (%p3491_p11), %v3381_v7 }
 0x2f6   : >> { %v3825_v5 = vmov %v3384_v52  ;;  %v979_v29 = vmax.f32 %v3798_v16, %v963_v32  ;;  %v1726_v23 = vpop.f32.mrb[26].mxu0 }
 0x2f7   : >> { %v1009_v35 = vmul.f32 2.0, %v3825_v5  ;;  %1771 = vmatprep.mubr.f32.mxu1 %v1023_v15  ;;  %v3397_v21 = vmin.f32 %v3800_v38, %v980_v33   ;;  %v966_v48 = vsub.f32 %v950_v60, %v1726_v23  ;;  %v910_v62 = vpop.f32.mrb[27].mxu0  ;;  %v3830_v15 = vld [vmem:[#allocation39_spill] sm:$0xff]  ;;  %v1026_v56 = vsub.f32 %v1010_v13, %v3162_v24  ;;  %1234 = vst [vmem:[%s2853_s29 + $0x30] sm:$0xff] (%p3491_p11), %v3825_v5 }
 0x2f8   : >> { %1772 = vmatmul.mubr.f32.gmra.mrb[20].mxu1 %v1024_v58  ;;  %v3400_v49 = vmin.f32 %v3800_v38, %v979_v29   ;;  %v965_v52 = vsub.f32 %v949_v36, %v910_v62  ;;  %v952_v54 = vsub.f32 %v3214_v28, %v3830_v15  ;;  %v3831_v29 = vld [vmem:[#allocation38_spill] sm:$0xff]  ;;  %v954_v62 = vsub.f32 %v3228_v30, %v3813_v2 }
 0x2f9   : >> { %v3828_v18 = vmov %v3397_v21  ;;  %v1025_v22 = vsub.f32 %v1009_v35, %v3167_v34  ;;  %v982_v32 = vmax.f32 %v3798_v16, %v966_v48  ;;  %v951_v23 = vsub.f32 %v3217_v4, %v3831_v29 }
 0x2fa   : >> { %v3829_v40 = vmov %v3400_v49  ;;  %v1012_v50 = vmul.f32 2.0, %v3828_v18  ;;  %v981_v60 = vmax.f32 %v3798_v16, %v965_v52  ;;  %v1729_v58 = vpop.f32.mrb[28].mxu0  ;;  %1237 = vst [vmem:[%s2853_s29 + $0x48] sm:$0xff] (%p3491_p11), %v3828_v18 }
 0x2fb   : >> { %v1011_v33 = vmul.f32 2.0, %v3829_v40  ;;  %1774 = vmatprep.mubr.f32.mxu1 %v1025_v22  ;;  %v3413_v29 = vmin.f32 %v3800_v38, %v982_v32   ;;  %v968_v34 = vsub.f32 %v952_v54, %v1729_v58  ;;  %v920_v35 = vpop.f32.mrb[29].mxu0  ;;  %v953_v54 = vsub.f32 %v3231_v17, %v3815_v43  ;;  %1236 = vst [vmem:[%s2853_s29 + $0x40] sm:$0xff] (%p3491_p11), %v3829_v40 }
 0x2fc   : >> { %1775 = vmatmul.mubr.f32.gmra.mrb[22].mxu1 %v1026_v56  ;;  %v3416_v36 = vmin.f32 %v3800_v38, %v981_v60   ;;  %v967_v21 = vsub.f32 %v951_v23, %v920_v35  ;;  %v1028_v49 = vsub.f32 %v1012_v50, %v3178_v41 }
 0x2fd   : >> { %v3832_v8 = vmov %v3413_v29  ;;  %v1027_v24 = vsub.f32 %v1011_v33, %v3185_v42  ;;  %v984_v48 = vmax.f32 %v3798_v16, %v968_v34 }
 0x2fe   : >> { %v3833_v15 = vmov %v3416_v36  ;;  %v1014_v13 = vmul.f32 2.0, %v3832_v8  ;;  %v983_v22 = vmax.f32 %v3798_v16, %v967_v21  ;;  %v1732_v32 = vpop.f32.mrb[30].mxu0  ;;  %1239 = vst [vmem:[%s2853_s29 + $0x58] sm:$0xff] (%p3491_p11), %v3832_v8 }
 0x2ff   : >> { %v1013_v52 = vmul.f32 2.0, %v3833_v15  ;;  %1777 = vmatprep.mubr.f32.mxu1 %v1027_v24  ;;  %v3429_v42 = vmin.f32 %v3800_v38, %v984_v48   ;;  %v970_v56 = vsub.f32 %v954_v62, %v1732_v32  ;;  %v930_v33 = vpop.f32.mrb[31].mxu0  ;;  %1238 = vst [vmem:[%s2853_s29 + $0x50] sm:$0xff] (%p3491_p11), %v3833_v15 }
 0x300   : >> { %1778 = vmatmul.mubr.f32.gmra.mrb[24].mxu1 %v1028_v49  ;;  %v3432_v32 = vmin.f32 %v3800_v38, %v983_v22   ;;  %v969_v60 = vsub.f32 %v953_v54, %v930_v33  ;;  %v1030_v29 = vsub.f32 %v1014_v13, %v3196_v12 }
 0x301   : >> { %v1029_v41 = vsub.f32 %v1013_v52, %v3201_v25  ;;  %v1016_v50 = vmul.f32 2.0, %v3429_v42  ;;  %v986_v58 = vmax.f32 %v3798_v16, %v970_v56  ;;  %1241 = vst [vmem:[%s2853_s29 + $0x68] sm:$0xff] (%p3491_p11), %v3429_v42 }
 0x302   : >> { %v3834_v2 = vmov %v3432_v32  ;;  %v985_v34 = vmax.f32 %v3798_v16, %v969_v60 }
 0x303   : >> { %v1015_v23 = vmul.f32 2.0, %v3834_v2  ;;  %1780 = vmatprep.mubr.f32.mxu1 %v1029_v41  ;;  %v3441_v33 = vmin.f32 %v3800_v38, %v986_v58   ;;  %v1032_v36 = vsub.f32 %v1016_v50, %v3214_v28  ;;  %1240 = vst [vmem:[%s2853_s29 + $0x60] sm:$0xff] (%p3491_p11), %v3834_v2 }
 0x304   : >> { %1781 = vmatmul.mubr.f32.gmra.mrb[26].mxu1 %v1030_v29  ;;  %v3444_v34 = vmin.f32 %v3800_v38, %v985_v34  }
 0x305   : >> { %v3835_v11 = vmov %v3441_v33  ;;  %v1031_v25 = vsub.f32 %v1015_v23, %v3217_v4 }
 0x306   : >> { %v3836_v14 = vmov %v3444_v34  ;;  %v1018_v35 = vmul.f32 2.0, %v3835_v11  ;;  %1243 = vst [vmem:[%s2853_s29 + $0x78] sm:$0xff] (%p3491_p11), %v3835_v11 }
 0x307   : >> { %v1017_v12 = vmul.f32 2.0, %v3836_v14  ;;  %1783 = vmatprep.mubr.f32.mxu1 %v1031_v25  ;;  %1242 = vst [vmem:[%s2853_s29 + $0x70] sm:$0xff] (%p3491_p11), %v3836_v14 }
 0x308   : >> { %1784 = vmatmul.mubr.f32.gmra.mrb[28].mxu1 %v1032_v36  ;;  %v1034_v24 = vsub.f32 %v1018_v35, %v3228_v30 }
 0x309   : >> { %v1033_v21 = vsub.f32 %v1017_v12, %v3231_v17 }
 0x30b   : >> { %1786 = vmatprep.mubr.f32.mxu1 %v1033_v21 }
 0x30c   : >> { %1787 = vmatmul.mubr.f32.gmra.mrb[30].mxu1 %v1034_v24 }
 0x3c3   : >> { %v1767_v13 = vpop.f32.mrb[16].mxu1 }
 0x3c4   : >> { %v1181_v48 = vadd.f32 %v1767_v13, %v3252_v46  ;;  %v1101_v62 = vpop.f32.mrb[17].mxu1 }
 0x3c5   : >> { %v1180_v4 = vadd.f32 %v1101_v62, %v3249_v9 }
 0x3c6   : >> { %v1197_v49 = vsub.f32 %v1181_v48, %v3817_v37 }
 0x3c7   : >> { %v1196_v28 = vsub.f32 %v1180_v4, %v3817_v37  ;;  %v1770_v52 = vpop.f32.mrb[18].mxu1 }
 0x3c8   : >> { %v3456_v35 = vmax.f32 %v1197_v49, 0.0   ;;  %v1183_v22 = vadd.f32 %v1770_v52, %v3262_v6  ;;  %v1111_v17 = vpop.f32.mrb[19].mxu1 }
 0x3c9   : >> { %v3459_v36 = vmax.f32 %v1196_v28, 0.0   ;;  %v1182_v30 = vadd.f32 %v1111_v17, %v3259_v63 }
 0x3ca   : >> { %v1199_v32 = vsub.f32 %v1183_v22, %v3817_v37 }
 0x3cb   : >> { %v1198_v46 = vsub.f32 %v1182_v30, %v3817_v37  ;;  %v1773_v54 = vpop.f32.mrb[20].mxu1 }
 0x3cc   : >> { %v1215_v63 = vmax.f32 %v1199_v32, 0.0   ;;  %v1185_v9 = vadd.f32 %v1773_v54, %v3272_v31  ;;  %v1121_v56 = vpop.f32.mrb[21].mxu1 }
 0x3cd   : >> { %v1214_v48 = vmax.f32 %v1198_v46, 0.0   ;;  %v1184_v33 = vadd.f32 %v1121_v56, %v3269_v61 }
 0x3ce   : >> { %v1201_v60 = vsub.f32 %v1185_v9, %v3817_v37 }
 0x3cf   : >> { %v1200_v6 = vsub.f32 %v1184_v33, %v3817_v37  ;;  %v1776_v41 = vpop.f32.mrb[22].mxu1 }
 0x3d0   : >> { %v1217_v61 = vmax.f32 %v1201_v60, 0.0   ;;  %v1187_v50 = vadd.f32 %v1776_v41, %v3282_v27  ;;  %v1131_v58 = vpop.f32.mrb[23].mxu1 }
 0x3d1   : >> { %v1216_v62 = vmax.f32 %v1200_v6, 0.0   ;;  %v1186_v29 = vadd.f32 %v1131_v58, %v3279_v59 }
 0x3d2   : >> { %v1203_v23 = vsub.f32 %v1187_v50, %v3817_v37  ;;  %v3847_v50 = vmov %v3825_v5 }
 0x3d3   : >> { %v1202_v31 = vsub.f32 %v1186_v29, %v3817_v37  ;;  %v1779_v34 = vpop.f32.mrb[24].mxu1  ;;  %v3842_v29 = vmov %v3832_v8 }
 0x3d4   : >> { %v1219_v59 = vmax.f32 %v1203_v23, 0.0   ;;  %v1189_v25 = vadd.f32 %v1779_v34, %v3292_v26  ;;  %v1141_v12 = vpop.f32.mrb[25].mxu1  ;;  %v3839_v34 = vmov %v3836_v14  ;;  %v3850_v23 = vmov %v3349_v1 }
 0x3d5   : >> { %v1218_v60 = vmax.f32 %v1202_v31, 0.0   ;;  %v1188_v21 = vadd.f32 %v1141_v12, %v3289_v57  ;;  %v3840_v31 = vmov %v3429_v42 }
 0x3d6   : >> { %v1205_v24 = vsub.f32 %v1189_v25, %v3817_v37  ;;  %v3846_v25 = vmov %v3381_v7 }
 0x3d7   : >> { %v1204_v27 = vsub.f32 %v1188_v21, %v3817_v37  ;;  %v1782_v13 = vpop.f32.mrb[26].mxu1  ;;  %v3852_v21 = vmov %v3335_v19 }
 0x3d8   : >> { %v1221_v57 = vmax.f32 %v1205_v24, 0.0   ;;  %v1191_v4 = vadd.f32 %v1782_v13, %v3302_v45  ;;  %v1151_v49 = vpop.f32.mrb[27].mxu1  ;;  %v3851_v24 = vmov %v3352_v3 }
 0x3d9   : >> { %v1220_v58 = vmax.f32 %v1204_v27, 0.0   ;;  %v1190_v28 = vadd.f32 %v1151_v49, %v3299_v55  ;;  %v3844_v27 = vmov %v3828_v18  ;;  %v3849_v49 = vmov %v3822_v0 }
 0x3da   : >> { %v1207_v52 = vsub.f32 %v1191_v4, %v3817_v37 }
 0x3db   : >> { %v1206_v26 = vsub.f32 %v1190_v28, %v3817_v37  ;;  %v1785_v22 = vpop.f32.mrb[28].mxu1  ;;  %v3845_v28 = vmov %v3829_v40 }
 0x3dc   : >> { %v1223_v55 = vmax.f32 %v1207_v52, 0.0   ;;  %v1193_v17 = vadd.f32 %v1785_v22, %v3312_v10  ;;  %v1161_v30 = vpop.f32.mrb[29].mxu1  ;;  %v3853_v22 = vmov %v3818_v44 }
 0x3dd   : >> { %v1222_v56 = vmax.f32 %v1206_v26, 0.0   ;;  %v1192_v32 = vadd.f32 %v1161_v30, %v3309_v53  ;;  %v3843_v30 = vmov %v3833_v15  ;;  %v3848_v26 = vmov %v3365_v39 }
 0x3de   : >> { %v1209_v46 = vsub.f32 %v1193_v17, %v3817_v37 }
 0x3df   : >> { %v1208_v45 = vsub.f32 %v1192_v32, %v3817_v37  ;;  %v1788_v54 = vpop.f32.mrb[30].mxu1  ;;  %v3841_v32 = vmov %v3834_v2  ;;  %308 = sbr.rel (!%p3491_p11) target bundleno = 48 (0x30), region = 86 }
 0x3e0   : >> { %v1225_v53 = vmax.f32 %v1209_v46, 0.0   ;;  %v1195_v9 = vadd.f32 %v1788_v54, %v3320_v51  ;;  %v1171_v33 = vpop.f32.mrb[31].mxu1 }
 0x3e1   : >> { %v1224_v54 = vmax.f32 %v1208_v45, 0.0   ;;  %v1194_v6 = vadd.f32 %v1171_v33, %v3318_v47  ;;  %v3838_v33 = vmov %v3835_v11 }
 0x3e2   : >> { %v1211_v41 = vsub.f32 %v1195_v9, %v3817_v37 }
 0x3e3   : >> { %v1210_v10 = vsub.f32 %v1194_v6, %v3817_v37 }
 0x3e4   : >> { %v1227_v51 = vmax.f32 %v1211_v41, 0.0  }
 0x3e5   : >> { %v1226_v52 = vmax.f32 %v1210_v10, 0.0  }
 0x3e6   : > { %2235 = shalt.err (!%p2232_p4)
}
 0x3e7   : > { %s2236_s9 = scalar_lea.hbm %s3619_s14, 2048  ;;  %s2240_s17 = scalar_lea.hbm %s3673_s6, 4096 }
 0x3e8   : > { %p2237_p7 = scmp.ne.s32.totalorder %s3619_s14, %s2236_s9  ;;  %p2241_p10 = scmp.lt.u32.totalorder %s3619_s14, %s3673_s6 }
 0x3e9   : > { %p2242_p11 = scmp.lt.u32.totalorder %s2240_s17, %s2236_s9  ;;  %p2244_p13 = scmp.lt.u32.totalorder %s2236_s9, %s3619_s14 }
 0x3ea   : > { %p2238_p8 = pnand %p2237_p7, %p2626_p5 }
 0x3eb   : > { %p2243_p12 = por %p2242_p11, %p2241_p10 }
 0x3ec   : > { %p2239_p9 = pneg %p2238_p8 }
 0x3ed   : > { %p2245_p0 = por %p2244_p13, %p2243_p12 }
 0x3ef   : > { %p2246_p1 = pnand %p2245_p0, %p2239_p9 }
 0x3f1   : > { %2249 = shalt.err (!%p2246_p1)
}
 0x3f2   : > { %s2551_s13 = smov 128   ;;  %s2552_s10 = smov 8  }
 0x3f3   : > { %1917 = dma.vmem_to_hbm [thread:$0]  (%p2626_p5), %s3622_s16, 2048, %s3619_s14, %s3626_s19, %s2551_s13, %s2551_s13, %s2552_s10  }
 0x3f4 PF: > { %p1923_p2 = scmp.ge.s32.totalorder %s2416_s24, 2  ;;  %s1273_s15 = sand.u32 1, %s2404_s21  }
 0x3f5   : > { %s1274_s20 = scalar_lea.sflag [#allocation3], %s1273_s15 }
 0x3f6   : > { %p1920_p3 = pnand %p1923_p2, %p2630_p6 }
 0x3f8   : > { %2399 = dma.done.wait (!%p1920_p3), %s1274_s20, 2048  }
 0x3f9   : > { %2401 = vsyncadd (!%p1920_p3), %s1274_s20, 4294965248  ;;  %p16_p4 = scmp.ge.s32.totalorder %s2613_s27, 4   ;;  %s3855_s21 = smov %s2408_s22 }
 0x3fa   : > { %s3856_s22 = smov %s2412_s23  ;;  %s3857_s23 = smov %s2624_s30 }
 0x3fb   : > { %s3858_s24 = smov %s2613_s27  ;;  %18 = sbr.rel (!%p16_p4) target bundleno = 3 (0x3), region = 97 }
 0x402   :  { %1279 = vsyncpa [#allocation3], 1 }
 0x403   :  { %1281 = vsyncpa [#allocation3 + $0x1], 1 }

</bundles_post_ra>
